<compile_context>
chip_gen: v5e
topology: v5e:2x2
jax: 0.10.0
libtpu: 0.0.40
codegen_flags: <defaults>
</compile_context>

<pallas_src>
import functools

import jax
import jax.numpy as jnp
from jax.experimental import pallas as pl
from jax.experimental.pallas import tpu as pltpu

EPS = 1e-5


def _layernorm_kernel(x_ref, gb_ref, o_ref, *, eps):
    # x_ref: (tile_m, K); gb_ref: (2, K) float32 [row 0 = gamma, row 1 = beta]
    x = x_ref[...].astype(jnp.float32)
    gamma = gb_ref[0:1, :]                        # (1, K), already f32
    beta = gb_ref[1:2, :]                         # (1, K), already f32

    u = jnp.mean(x, axis=-1, keepdims=True)       # (tile_m, 1)
    d = x - u
    s = jnp.mean(d * d, axis=-1, keepdims=True)   # biased variance (matches torch ref)
    inv = jax.lax.rsqrt(s + eps)                  # EUP rsqrt

    # Fused affine: y = d * (gamma * inv) + beta  -- one lane-dense (tile_m, K) store.
    o_ref[...] = (d * (gamma * inv) + beta).astype(o_ref.dtype)


def _round_up(x, m):
    return (x + m - 1) // m * m


def _vmem_capacity_bytes():
    try:
        return int(pltpu.get_tpu_info().vmem_capacity_bytes)
    except Exception:
        return 64 << 20  # conservative default (v7x-class per-TC VMEM)


def layernorm_pallas(x, weight, bias, *, eps=EPS, tile_m=None):
    """x: (..., K) -> (..., K). weight/bias: (K,)."""
    orig_shape = x.shape
    K = orig_shape[-1]
    x2 = x.reshape(-1, K)
    M = x2.shape[0]

    dtype_bytes = jnp.dtype(x.dtype).itemsize
    sublane = max(8, 32 // max(1, dtype_bytes))   # 8 f32, 16 bf16, 32 int8/fp8

    # Generation-aware block-size / VMEM targets.
    vmem_cap = _vmem_capacity_bytes()
    if vmem_cap <= (64 << 20):            # v7x-class: 64 MiB VMEM per TC
        target_block_bytes = 8 << 20
        vmem_cap_limit = 48 << 20
    else:                                 # v5e / v6e-class: 128 MiB VMEM
        target_block_bytes = 16 << 20
        vmem_cap_limit = 96 << 20

    if tile_m is None:
        rows = target_block_bytes // max(1, K * dtype_bytes)
        rows = max(sublane, (rows // sublane) * sublane)
        # Never larger than the (sublane-rounded) row count.
        rows = min(rows, _round_up(M, sublane))
        # Keep >=2 grid steps when possible so v7x's two TCs both get work.
        if M > sublane:
            half = _round_up(pl.cdiv(M, 2), sublane)
            rows = min(rows, max(sublane, half))
        tile_m = int(rows)
    else:
        tile_m = max(sublane, _round_up(int(tile_m), sublane))

    grid = (pl.cdiv(M, tile_m),)          # partial last block handled by Pallas
    # Note: garbage rows in the partial last block may produce NaN intermediates in
    # rsqrt; this is benign because their writes are dropped.

    # gamma/beta stay float32 (no quantization to x.dtype), packed as one (2, K) block.
    gb = jnp.stack([weight, bias], axis=0).astype(jnp.float32)

    # VMEM budget: double-buffered input + output tiles + params + headroom.
    vmem_bytes = 2 * 2 * tile_m * K * dtype_bytes + 2 * 2 * K * 4 + (2 << 20)
    vmem_bytes = int(min(max(vmem_bytes, 4 << 20), vmem_cap_limit))

    out = pl.pallas_call(
        functools.partial(_layernorm_kernel, eps=eps),
        out_shape=jax.ShapeDtypeStruct((M, K), x.dtype),
        grid_spec=pltpu.PrefetchScalarGridSpec(
            num_scalar_prefetch=0,
            grid=grid,
            in_specs=[
                pl.BlockSpec((tile_m, K), lambda i: (i, 0)),
                pl.BlockSpec((2, K), lambda i: (0, 0)),
            ],
            out_specs=pl.BlockSpec((tile_m, K), lambda i: (i, 0)),
        ),
        compiler_params=pltpu.CompilerParams(
            dimension_semantics=("parallel",),   # rows shard across v7x's 2 TCs
            vmem_limit_bytes=vmem_bytes,
        ),
    )(x2, gb)

    return out.reshape(orig_shape)


def layernorm_reference(x, weight, bias, eps=EPS):
    x = x.astype(jnp.float32)
    u = jnp.mean(x, axis=-1, keepdims=True)
    s = jnp.mean((x - u) ** 2, axis=-1, keepdims=True)
    xn = (x - u) / jnp.sqrt(s + eps)
    return weight * xn + bias


if __name__ == "__main__":
    key = jax.random.PRNGKey(0)
    k_x, k_g, k_b, k_x2, k_x3 = jax.random.split(key, 5)

    batch, seq, hidden = 2, 8, 128
    x = jax.random.normal(k_x, (batch, seq, hidden), dtype=jnp.float32)
    gamma = 1.0 + 0.1 * jax.random.normal(k_g, (hidden,), dtype=jnp.float32)
    beta = 0.1 * jax.random.normal(k_b, (hidden,), dtype=jnp.float32)

    # Case 1: basic f32, auto tile.
    out = jax.block_until_ready(layernorm_pallas(x, gamma, beta))
    ref = layernorm_reference(x, gamma, beta)
    assert out.shape == x.shape
    assert jnp.allclose(out, ref, atol=1e-5, rtol=1e-5), "mismatch vs reference (case 1)"

    # Case 2: ragged row count (M=21) + small explicit tile -> partial last block path.
    x_r = jax.random.normal(k_x2, (3, 7, hidden), dtype=jnp.float32)
    out_r = jax.block_until_ready(layernorm_pallas(x_r, gamma, beta, tile_m=8))
    ref_r = layernorm_reference(x_r, gamma, beta)
    assert out_r.shape == x_r.shape
    assert jnp.allclose(out_r, ref_r, atol=1e-5, rtol=1e-5), "mismatch vs reference (case 2)"

    # Case 3: bf16 HBM I/O (compute stays f32 in-kernel; gamma/beta stay f32).
    x_b = jax.random.normal(k_x3, (4, 16, hidden), dtype=jnp.float32).astype(jnp.bfloat16)
    out_b = jax.block_until_ready(layernorm_pallas(x_b, gamma, beta))
    ref_b = layernorm_reference(x_b, gamma, beta)
    assert out_b.shape == x_b.shape
    assert out_b.dtype == jnp.bfloat16
    assert jnp.allclose(out_b.astype(jnp.float32), ref_b, atol=5e-2, rtol=5e-2), \
        "mismatch vs reference (case 3)"

    print("KERNEL_OK")
</pallas_src>

<mosaic_0001>
module attributes {stable_mosaic.version = 11 : i64} {
  func.func @_layernorm_kernel(%arg0: i32, %arg1: memref<8x128xf32, #tpu.memory_space<vmem>>, %arg2: memref<2x128xf32, #tpu.memory_space<vmem>>, %arg3: memref<8x128xf32, #tpu.memory_space<vmem>>) attributes {dimension_semantics = [#tpu.dimension_semantics<parallel>], iteration_bounds = array<i64: 2>, scalar_prefetch = 0 : i64, scratch_operands = 0 : i64, tpu.core_type = #tpu.core_type<tc>, window_params = [{transform_indices = @transform_0, window_bounds = array<i64: 8, 128>}, {pipeline_mode = #tpu.pipeline_mode<synchronous>, transform_indices = @transform_1, window_bounds = array<i64: 2, 128>}, {transform_indices = @transform_2, window_bounds = array<i64: 8, 128>}]} {
    %c0 = arith.constant 0 : index
    %c0_0 = arith.constant 0 : index
    %0 = vector.load %arg1[%c0, %c0_0] : memref<8x128xf32, #tpu.memory_space<vmem>>, vector<8x128xf32>
    %c0_1 = arith.constant 0 : index
    %c0_2 = arith.constant 0 : index
    %1 = vector.load %arg2[%c0_1, %c0_2] : memref<2x128xf32, #tpu.memory_space<vmem>>, vector<1x128xf32>
    %c1 = arith.constant 1 : index
    %c0_3 = arith.constant 0 : index
    %2 = vector.load %arg2[%c1, %c0_3] : memref<2x128xf32, #tpu.memory_space<vmem>>, vector<1x128xf32>
    %cst = arith.constant dense<0.000000e+00> : vector<8xf32>
    %3 = vector.multi_reduction <add>, %0, %cst [1] : vector<8x128xf32> to vector<8xf32>
    %4 = vector.shape_cast %3 : vector<8xf32> to vector<8x1xf32>
    %cst_4 = arith.constant 1.280000e+02 : f32
    %5 = vector.broadcast %cst_4 : f32 to vector<8x1xf32>
    %6 = arith.divf %4, %5 : vector<8x1xf32>
    %7 = vector.broadcast %6 : vector<8x1xf32> to vector<8x128xf32>
    %8 = arith.subf %0, %7 : vector<8x128xf32>
    %9 = arith.mulf %8, %8 : vector<8x128xf32>
    %cst_5 = arith.constant dense<0.000000e+00> : vector<8xf32>
    %10 = vector.multi_reduction <add>, %9, %cst_5 [1] : vector<8x128xf32> to vector<8xf32>
    %11 = vector.shape_cast %10 : vector<8xf32> to vector<8x1xf32>
    %cst_6 = arith.constant 1.280000e+02 : f32
    %12 = vector.broadcast %cst_6 : f32 to vector<8x1xf32>
    %13 = arith.divf %11, %12 : vector<8x1xf32>
    %cst_7 = arith.constant 9.99999974E-6 : f32
    %14 = vector.broadcast %cst_7 : f32 to vector<8x1xf32>
    %15 = arith.addf %13, %14 : vector<8x1xf32>
    %16 = math.rsqrt %15 : vector<8x1xf32>
    %17 = vector.broadcast %1 : vector<1x128xf32> to vector<8x128xf32>
    %18 = vector.broadcast %16 : vector<8x1xf32> to vector<8x128xf32>
    %19 = arith.mulf %17, %18 : vector<8x128xf32>
    %20 = arith.mulf %8, %19 : vector<8x128xf32>
    %21 = vector.broadcast %2 : vector<1x128xf32> to vector<8x128xf32>
    %22 = arith.addf %20, %21 : vector<8x128xf32>
    %c0_8 = arith.constant 0 : index
    %c0_9 = arith.constant 0 : index
    %23 = vector.load %arg3[%c0_8, %c0_9] : memref<8x128xf32, #tpu.memory_space<vmem>>, vector<8x128xf32>
    tpu.vector_store %arg3[%c0_8, %c0_9], %22 {strides = array<i32>} : memref<8x128xf32, #tpu.memory_space<vmem>>, vector<8x128xf32>,
    return
  }
  func.func @transform_0(%arg0: i32) -> (i32, i32) {
    %c0_i32 = arith.constant 0 : i32
    %c0_i32_0 = arith.constant 0 : i32
    return %arg0, %c0_i32 : i32, i32
  }
  func.func @transform_1(%arg0: i32) -> (i32, i32) {
    %c0_i32 = arith.constant 0 : i32
    %c0_i32_0 = arith.constant 0 : i32
    %c0_i32_1 = arith.constant 0 : i32
    return %c0_i32, %c0_i32_0 : i32, i32
  }
  func.func @transform_2(%arg0: i32) -> (i32, i32) {
    %c0_i32 = arith.constant 0 : i32
    %c0_i32_0 = arith.constant 0 : i32
    return %arg0, %c0_i32 : i32, i32
  }
}

</mosaic_0001>

<bundles_post_ra>
// kernel: tpu_custom_call.1
= control target key start
LH: loop header
LB: loop body
LE: loop exit
PB: predicated region body
PF: predicated region fallthrough
CT: control target
= control target key end

     0   :  { %7 = vsyncpa [#allocation3], 0  ;;  %s676_s0 = inlined_call_operand.hbm [shape: f32[16,128], index: 0, kind: input, shape index: {}]   ;;  %s677_s1 = inlined_call_operand.hbm [shape: f32[2,128], index: 1, kind: input, shape index: {}]   ;;  %s678_s2 = inlined_call_operand.hbm [shape: f32[16,128], index: 2, kind: output, shape index: {}]  }
   0x1   :  { %9 = vsyncpa [#allocation3 + $0x1], 0 }
   0x2   :  { %10 = vsyncpa [#allocation6], 0 }
   0x3   :  { %11 = vsyncpa [#allocation4], 0 }
   0x4   :  { %13 = vsyncpa [#allocation4 + $0x1], 0  ;;  %s534_s9 = smov 0   ;;  %s536_s10 = smov 0  }
   0x5   :  { %s538_s11 = smov 0   ;;  %s540_s12 = smov 0  }
   0x6 LB: > { %s555_s13 = sadd.s32 4294967295, %s515_s12   ;;  %s307_s14 = sadd.s32 4294967294, %s515_s12   ;;  %s515_s12 = sphi %s540_s12, %s688_s12   ;;  %s511_s11 = sphi %s538_s11, %s687_s11   ;;  %s507_s10 = sphi %s536_s10, %s686_s10   ;;  %s503_s9 = sphi %s534_s9, %s685_s9  }
   0x7   : > { %p39_p0 = scmp.ne.s32.totalorder %s507_s10, %s503_s9  ;;  %p40_p1 = scmp.eq.s32.totalorder %s555_s13, 0 }
   0x8   : > { %p84_p2 = scmp.eq.s32.totalorder %s555_s13, 1  ;;  %p90_p3 = scmp.eq.s32.totalorder %s307_s14, 1 }
   0x9   : > { %p564_p4 = por %p40_p1, %p39_p0  ;;  %p308_p5 = scmp.ge.s32.totalorder %s515_s12, 1 }
   0xa   : > { %p569_p6 = por %p90_p3, %p39_p0  ;;  %p97_p7 = scmp.lt.s32.totalorder %s515_s12, 3 }
   0xb   : > { %s109_s19 = sshll.u32 %s677_s1, 4  ;;  %s517_s21 = smov [#allocation5]   ;;  %s110_s19 = int_to_ptr.hbm [resolvable:$true] %s109_s19 }
   0xc   : > { %p577_p8 = pnand %p308_p5, %p97_p7  ;;  %s111_s22 = sshll.u32 %s517_s21, 4  ;;  %s112_s22 = int_to_ptr.vmem [resolvable:$true] %s111_s22 }
   0xd   : > { %s587_s23 = sadd.s32 1, %s515_s12   ;;  %s26_s24 = sadd.s32 1, %s511_s11 }
   0xe   : > { %p329_p10 = pneg %p577_p8  ;;  %s23_s25 = ssub.s32 %s515_s12, %s587_s23 }
   0xf   : > { %p24_p12 = scmp.eq.s32.totalorder %s23_s25, 0  ;;  %p33_p13 = scmp.ne.s32.totalorder %s511_s11, %s507_s10 }
  0x10   : > { %p330_p11 = pnand %p329_p10, %p40_p1  ;;  %p34_p0 = scmp.eq.s32.totalorder %s515_s12, 0 }
  0x11   : > { %s596_s26 = scalar_select %p24_p12, %s511_s11, %s26_s24  }
  0x12   : > { %332 = dma.hbm_to_vmem [thread:$0]  (!%p330_p11), %s110_s19, 32, %s112_s22, [#allocation6]  }
  0x13   : > { %p600_p3 = por %p84_p2, %p33_p13  ;;  %p342_p5 = scmp.lt.s32.totalorder %s515_s12, 2 }
  0x14   : > { %s122_s28 = sand.u32 1, %s511_s11   ;;  %s312_s29 = sshll.u32 %s515_s12, 3 }
  0x15   : > { %p35_p7 = por %p34_p0, %p33_p13  ;;  %s311_s30 = sshll.u32 %s122_s28, 3 }
  0x16   : > { %s130_s5 = scalar_lea.hbm %s676_s0, %s312_s29  ;;  %s126_s7 = scalar_lea.vmem [#allocation2], %s311_s30 }
  0x17   : > { %s132_s6 = sshll.u32 %s130_s5, 4  ;;  %s134_s8 = sshll.u32 %s126_s7, 4  ;;  %s133_s6 = int_to_ptr.hbm [resolvable:$true] %s132_s6  ;;  %s135_s8 = int_to_ptr.vmem [resolvable:$true] %s134_s8 }
  0x18   : > { %p610_p10 = pnand %p342_p5, %p35_p7  ;;  %s123_s17 = scalar_lea.sflag [#allocation3], %s122_s28 }
  0x19   : > { %s415_s18 = sshra.s32 %s133_s6, 4  ;;  %s422_s24 = scalar_lea.hbm %s676_s0, 16  ;;  %s416_s18 = int_to_ptr.hbm [resolvable:$true] %s415_s18 }
  0x1a   : > { %s417_s19 = scalar_lea.hbm %s416_s18, 8  ;;  %p419_p11 = pneg %p610_p10 }
  0x1b   : > { %p418_p2 = scmp.ne.s32.totalorder %s416_s18, %s417_s19  ;;  %p423_p0 = scmp.lt.s32.totalorder %s416_s18, %s676_s0 }
  0x1c   : > { %p424_p5 = scmp.lt.s32.totalorder %s422_s24, %s417_s19 }
  0x1d   : > { %p420_p12 = pnand %p419_p11, %p418_p2 }
  0x1e   : > { %p425_p7 = por %p424_p5, %p423_p0 }
  0x1f   : > { %p421_p13 = pneg %p420_p12 }
  0x21   : > { %p426_p9 = pnand %p425_p7, %p421_p13 }
  0x23   : > { %429 = shalt.err (!%p426_p9)
}
  0x24   : > { %336 = dma.hbm_to_vmem [thread:$0]  (!%p610_p10), %s133_s6, 128, %s135_s8, %s123_s17  }
  0x25   : > { %143 = sbr.rel (%p577_p8) target bundleno = 315 (0x13b), region = 28  ;;  %s627_s28 = sand.u32 (!%p577_p8), 1, %s507_s10  }
  0x26   : > { %s314_s30 = sshll.u32 (!%p577_p8), %s627_s28, 3  ;;  %s146_s3 = scalar_lea.sflag (!%p577_p8), [#allocation3], %s627_s28 }
  0x27   : > { %s149_s4 = scalar_lea.vmem (!%p577_p8), [#allocation2], %s314_s30 }
  0x2a   : > { %490 = dma.done.wait (%p564_p4), %s146_s3, 128  }
  0x2b   : > { %492 = vsyncadd (%p564_p4), %s146_s3, 4294967168 }
  0x2c   : > { %494 = dma.done.wait (%p40_p1), [#allocation6], 32  }
  0x2d   : > { %496 = vsyncadd (%p40_p1), [#allocation6], 4294967264  ;;  %v176_v0 = vld [vmem:[%s149_s4] sm:$0xff]  ;;  %v518_v1 = vmov 128.0   ;;  %s318_s15 = sshll.u32 %s555_s13, 3  ;;  %s175_s7 = scalar_lea.vmem [#allocation7], %s314_s30 }
  0x2e   : > { %179 = vadd.xlane.f32.xlu0 %v176_v0  ;;  %381 = vrcp.f32 %v518_v1  ;;  %v379_v20 = vld [vmem:[#allocation5] ss:$0 sm:$0xff]  ;;  %s222_s6 = scalar_lea.hbm %s678_s2, %s318_s15  ;;  %v380_v24 = vld [vmem:[#allocation5 + $0x1] ss:$0 sm:$0xff]  ;;  %s224_s8 = sshll.u32 %s175_s7, 4  ;;  %s225_s8 = int_to_ptr.vmem [resolvable:$true] %s224_s8 }
  0x2f   : > { %s226_s14 = sshll.u32 %s222_s6, 4  ;;  %s212_s13 = scalar_lea.sflag [#allocation4], %s627_s28  ;;  %s227_s14 = int_to_ptr.hbm [resolvable:$true] %s226_s14 }
  0x30   : > { %s459_s17 = sshra.s32 %s227_s14, 4  ;;  %s465_s22 = scalar_lea.hbm %s678_s2, 16  ;;  %s460_s17 = int_to_ptr.hbm [resolvable:$true] %s459_s17 }
  0x31   : > { %s461_s18 = scalar_lea.hbm %s460_s17, 8  ;;  %p466_p9 = scmp.lt.s32.totalorder %s460_s17, %s678_s2 }
  0x32   : > { %p462_p1 = scmp.ne.s32.totalorder %s460_s17, %s461_s18  ;;  %p467_p10 = scmp.lt.s32.totalorder %s465_s22, %s461_s18 }
  0x34   : > { %v382_v2 = vpop.eup %381  ;;  %p463_p4 = pnand %p462_p1, %p600_p3  ;;  %p468_p2 = por %p467_p10, %p466_p9 }
  0x35   : > { %v182_v3 = vmul.f32 128.0, %v382_v2  ;;  %vm186_vm0 = vweird.f32 %v382_v2 }
  0x36   : > { %p464_p8 = pneg %p463_p4 }
  0x37   : > { %v183_v4 = vsub.f32 1.0, %v182_v3 }
  0x38   : > { %p469_p11 = pnand %p468_p2, %p464_p8 }
  0x39   : > { %v184_v5 = vmul.f32 %v382_v2, %v183_v4 }
  0x3b   : > { %v185_v6 = vadd.f32 %v382_v2, %v184_v5 }
  0x3d   : > { %v187_v7 = vsel %vm186_vm0, %v382_v2, %v185_v6 }
  0xa1   : > { %v180_v8 = vpop.xlane.xlu0 %179 }
  0xa2   : > { %v188_v9 = vmul.f32 %v187_v7, %v180_v8 }
  0xa4   : > { %v189_v10 = vsub.f32 %v176_v0, %v188_v9 }
  0xa6   : > { %v190_v11 = vmul.f32 %v189_v10, %v189_v10 }
  0xa8   : > { %191 = vadd.xlane.f32.xlu0 %v190_v11 }
 0x11b   : > { %v192_v12 = vpop.xlane.xlu0 %191 }
 0x11c   : > { %v193_v13 = vmul.f32 %v192_v12, %v187_v7 }
 0x11e   : > { %v194_v14 = vadd.f32 1e-05, %v193_v13 }
 0x120   : > { %383 = vrsqrt.f32 %v194_v14  ;;  %vm201_vm2 = vweird.f32 %v194_v14 }
 0x126   : > { %v384_v15 = vpop.eup %383 }
 0x127   : > { %v196_v16 = vmul.f32 %v384_v15, %v194_v14  ;;  %vm202_vm1 = vweird.f32 %v384_v15 }
 0x128   : > { %vm203_vm3 = vmor %vm201_vm2, %vm202_vm1 }
 0x129   : > { %v197_v17 = vmul.f32 %v384_v15, %v196_v16 }
 0x12b   : > { %v198_v18 = vmul.f32 0.5, %v197_v17 }
 0x12d   : > { %v199_v19 = vsub.f32 1.5, %v198_v18 }
 0x12f   : > { %v200_v21 = vmul.f32 %v384_v15, %v199_v19 }
 0x131   : > { %v204_v22 = vsel %vm203_vm3, %v384_v15, %v200_v21 }
 0x132   : > { %v206_v23 = vmul.f32 %v379_v20, %v204_v22 }
 0x134   : > { %v207_v25 = vmul.f32 %v206_v23, %v189_v10 }
 0x136   : > { %v209_v26 = vadd.f32 %v380_v24, %v207_v25 }
 0x138   : > { %210 = vst [vmem:[%s175_s7] sm:$0xff] %v209_v26 }
 0x139   : > { %472 = shalt.err (!%p469_p11)
}
 0x13a   : > { %327 = dma.vmem_to_hbm [thread:$0]  (%p600_p3), %s225_s8, 128, %s227_s14, %s212_s13  }
 0x13b PF: > { %s238_s29 = sand.u32 1, %s503_s9   ;;  %p684_p12 = scmp.ge.s32.totalorder %s515_s12, 2 }
 0x13c   : > { %s239_s28 = scalar_lea.sflag [#allocation4], %s238_s29 }
 0x13d   : > { %p338_p13 = pnand %p684_p12, %p569_p6 }
 0x13f   : > { %p339_p0 = pneg %p338_p13 }
 0x141   : > { %498 = dma.done.wait (%p339_p0), %s239_s28, 128  }
 0x142   : > { %500 = vsyncadd (%p339_p0), %s239_s28, 4294967168  ;;  %p16_p5 = scmp.ge.s32.totalorder %s587_s23, 4   ;;  %s685_s9 = smov %s507_s10 }
 0x143   : > { %s686_s10 = smov %s511_s11  ;;  %s687_s11 = smov %s596_s26 }
 0x144   : > { %s688_s12 = smov %s587_s23  ;;  %18 = sbr.rel (!%p16_p5) target bundleno = 6 (0x6), region = 77 }
 0x149   :  { %245 = vsyncpa [#allocation3], 1 }
 0x14a   :  { %247 = vsyncpa [#allocation3 + $0x1], 1 }
 0x14b   :  { %248 = vsyncpa [#allocation6], 1 }
 0x14c   :  { %249 = vsyncpa [#allocation4], 1 }
 0x14d   :  { %251 = vsyncpa [#allocation4 + $0x1], 1 }

</bundles_post_ra>
